<compile_context>
chip_gen: v6e
topology: v6e:2x2x1
jax: 0.10.0
libtpu: 0.0.40
codegen_flags: <defaults>
</compile_context>

<pallas_src>
import jax
import jax.numpy as jnp
import numpy as np
from jax.experimental import pallas as pl
from jax.experimental.pallas import tpu as pltpu


# ---- packed-slab row layout (all rows are 128 lanes of f32) ------------------
_ROW_X = 0      # 16 row/col-shifted copies of the 8x8 input plane (16 * 8 rows)
_ROW_WP = 128   # 3 fc1 weight planes, one per pooled column j (3 * 8 rows)
_ROW_W2 = 152   # fc2 plane: row m holds W2[m,:5] in lanes 0..4, b2[m] in lane 5
_ROW_B1 = 160   # fc1 bias row: lanes 0..4 = b1, lane 5 = 1.0 (feeds fc2 bias)
_N_ROWS = 168


def net_kernel(cs_ref, slab_ref, o_ref):
    # cs_ref  : (16,)      f32 SMEM  — conv taps row-major in [0:9], bias at [9]
    # slab_ref: (168, 128) f32 VMEM  — packed operands (see layout above)
    # o_ref   : (8, 128)   f32 VMEM  — logit m at [m, 0], m = 0, 1

    # Hoist all conv scalars out of the MAC chain (single SMEM read pass).
    w = [cs_ref[k] for k in range(9)]
    cb = cs_ref[9]

    def xcopy(rs, cs):
        # Pre-shifted input copy: xcopy(rs, cs)[r, c] == x[r + rs, c + cs].
        base = _ROW_X + 8 * (4 * rs + cs)
        return slab_ref[base:base + 8, :]

    def conv_shift(a, b):
        # relu(conv1(x) + bias) evaluated at offset (a, b):
        #   conv_shift(a, b)[r, c] == relu(conv)[r + a, c + b]   (valid r, c < 6)
        acc = xcopy(a, b) * w[0]
        for di in range(3):
            for dj in range(3):
                if di == 0 and dj == 0:
                    continue
                acc = acc + xcopy(a + di, b + dj) * w[3 * di + dj]
        return jnp.maximum(acc + cb, 0.0)

    # 2x2 / stride-2 max pool fused with the conv: pooled[i, j] lands at [2i, 2j].
    pooled = jnp.maximum(
        jnp.maximum(conv_shift(0, 0), conv_shift(0, 1)),
        jnp.maximum(conv_shift(1, 0), conv_shift(1, 1)))

    # fc1 on the VPU: broadcast pooled column 2j across lanes, multiply with the
    # weight plane (W1[n, 3i+j] sits at sublane 2i, lane n), reduce over sublanes.
    acc1 = jnp.zeros((8, 128), jnp.float32)
    for j in range(3):
        pj = jnp.broadcast_to(pooled[:, 2 * j:2 * j + 1], (8, 128))
        acc1 = acc1 + pj * slab_ref[_ROW_WP + 8 * j:_ROW_WP + 8 * j + 8, :]
    h = jnp.sum(acc1, axis=0, keepdims=True)                  # (1,128): h[n] at lane n
    h = jnp.maximum(h + slab_ref[_ROW_B1:_ROW_B1 + 1, :], 0.0)  # +b1; lane 5 -> 1.0

    # fc2 on the VPU: sublane-broadcast h, multiply by (W2 | b2) plane, lane-reduce.
    prod = jnp.broadcast_to(h, (8, 128)) * slab_ref[_ROW_W2:_ROW_W2 + 8, :]
    logits = jnp.sum(prod, axis=1, keepdims=True)             # (8,1): logit m at sublane m

    # Lane-dense full-block store (no masked partial stores).
    o_ref[...] = jnp.broadcast_to(logits, (8, 128))


def _pack_operands(x_hw, conv_w, conv_b, fc1_w, fc1_b, fc2_w, fc2_b):
    """Layout plumbing only (no arithmetic): build the SMEM scalars and the
    single VMEM slab consumed by the kernel."""
    f32 = jnp.float32

    # 16 row/col-shifted copies of the zero-padded 8x8 plane.
    xpad = jnp.zeros((11, 131), f32).at[:8, :8].set(x_hw)
    xcopies = jnp.stack([xpad[rs:rs + 8, cs:cs + 128]
                         for rs in range(4) for cs in range(4)])   # (16, 8, 128)

    slab = jnp.zeros((_N_ROWS, 128), f32)
    slab = slab.at[_ROW_X:_ROW_X + 128, :].set(xcopies.reshape(128, 128))

    # fc1 weight planes: W1[n, 3i+j] -> row _ROW_WP + 8j + 2i, lane n.
    w1_ijn = fc1_w.T.reshape(3, 3, 5)                              # [i, j, n]
    wp = (jnp.zeros((3, 8, 128), f32)
             .at[:, 0:6:2, 0:5].set(jnp.transpose(w1_ijn, (1, 0, 2))))
    slab = slab.at[_ROW_WP:_ROW_WP + 24, :].set(wp.reshape(24, 128))

    # fc2 plane: row _ROW_W2+m = [W2[m, 0:5], b2[m], 0, ...].
    slab = slab.at[_ROW_W2:_ROW_W2 + 2, 0:5].set(fc2_w)
    slab = slab.at[_ROW_W2:_ROW_W2 + 2, 5].set(fc2_b)

    # fc1 bias row; lane 5 carries 1.0 so the fc2 bias rides the lane reduction.
    slab = slab.at[_ROW_B1, 0:5].set(fc1_b)
    slab = slab.at[_ROW_B1, 5].set(1.0)

    # conv scalars -> SMEM: 9 taps row-major + bias (padded to 16).
    cs = (jnp.zeros((16,), f32)
             .at[0:9].set(conv_w.reshape(9))
             .at[9].set(conv_b[0]))
    return cs, slab


@jax.jit
def net_forward(x_nchw, conv_w, conv_b, fc1_w, fc1_b, fc2_w, fc2_b):
    """x_nchw: (1,1,8,8). Weights in PyTorch convention:
       conv_w (1,1,3,3), conv_b (1,), fc1_w (5,9), fc1_b (5,), fc2_w (2,5), fc2_b (2,)."""
    # The module's view(-1, numel) flatten only type-checks for a single 1x8x8 image.
    assert x_nchw.shape == (1, 1, 8, 8), "Net requires input of shape (1, 1, 8, 8)"

    x_hw = x_nchw.reshape(8, 8).astype(jnp.float32)
    cs, slab = _pack_operands(
        x_hw,
        conv_w.astype(jnp.float32), conv_b.astype(jnp.float32),
        fc1_w.astype(jnp.float32), fc1_b.astype(jnp.float32),
        fc2_w.astype(jnp.float32), fc2_b.astype(jnp.float32))

    smem = pl.BlockSpec(memory_space=pltpu.MemorySpace.SMEM)
    vmem = pl.BlockSpec(memory_space=pltpu.MemorySpace.VMEM)

    out_block = pl.pallas_call(
        net_kernel,
        out_shape=jax.ShapeDtypeStruct((8, 128), jnp.float32),
        in_specs=[smem, vmem],
        out_specs=vmem,
    )(cs, slab)

    return out_block[0:2, 0].reshape(1, 2)


def ref_forward(x_nchw, conv_w, conv_b, fc1_w, fc1_b, fc2_w, fc2_b):
    """Pure-JAX reference mirroring the PyTorch forward exactly."""
    xi = x_nchw[0, 0]
    conv = jnp.zeros((6, 6), jnp.float32)
    for di in range(3):
        for dj in range(3):
            conv = conv + xi[di:di + 6, dj:dj + 6] * conv_w[0, 0, di, dj]
    conv = jax.nn.relu(conv + conv_b[0])
    pooled = conv.reshape(3, 2, 3, 2).max(axis=(1, 3))
    flat = pooled.reshape(1, 9)
    h = jax.nn.relu(flat @ fc1_w.T + fc1_b[None, :])
    return h @ fc2_w.T + fc2_b[None, :]


if __name__ == "__main__":
    key = jax.random.PRNGKey(0)
    kx, k1, k2, k3, k4, k5, k6 = jax.random.split(key, 7)

    # Deterministic synthetic parameters (shapes from Net.__init__).
    x = jax.random.normal(kx, (1, 1, 8, 8), jnp.float32)
    conv_w = jax.random.normal(k1, (1, 1, 3, 3), jnp.float32) * 0.3
    conv_b = jax.random.normal(k2, (1,), jnp.float32) * 0.1
    fc1_w = jax.random.normal(k3, (5, 9), jnp.float32) * 0.3
    fc1_b = jax.random.normal(k4, (5,), jnp.float32) * 0.1
    fc2_w = jax.random.normal(k5, (2, 5), jnp.float32) * 0.3
    fc2_b = jax.random.normal(k6, (2,), jnp.float32) * 0.1

    out = net_forward(x, conv_w, conv_b, fc1_w, fc1_b, fc2_w, fc2_b)
    out = jax.block_until_ready(out)

    expected = ref_forward(x, conv_w, conv_b, fc1_w, fc1_b, fc2_w, fc2_b)
    np.testing.assert_allclose(np.asarray(out), np.asarray(expected),
                               rtol=1e-5, atol=1e-5)
    print("KERNEL_OK")
</pallas_src>

<mosaic_0001>
module attributes {stable_mosaic.version = 11 : i64} {
  func.func @net_kernel(%arg0: memref<16xf32, #tpu.memory_space<smem>>, %arg1: memref<168x128xf32, #tpu.memory_space<vmem>>, %arg2: memref<8x128xf32, #tpu.memory_space<vmem>>) attributes {dimension_semantics = [], scalar_prefetch = 0 : i64, scratch_operands = 0 : i64, tpu.core_type = #tpu.core_type<tc>} {
    %c0 = arith.constant 0 : index
    %0 = memref.load %arg0[%c0] : memref<16xf32, #tpu.memory_space<smem>>
    %c1 = arith.constant 1 : index
    %1 = memref.load %arg0[%c1] : memref<16xf32, #tpu.memory_space<smem>>
    %c2 = arith.constant 2 : index
    %2 = memref.load %arg0[%c2] : memref<16xf32, #tpu.memory_space<smem>>
    %c3 = arith.constant 3 : index
    %3 = memref.load %arg0[%c3] : memref<16xf32, #tpu.memory_space<smem>>
    %c4 = arith.constant 4 : index
    %4 = memref.load %arg0[%c4] : memref<16xf32, #tpu.memory_space<smem>>
    %c5 = arith.constant 5 : index
    %5 = memref.load %arg0[%c5] : memref<16xf32, #tpu.memory_space<smem>>
    %c6 = arith.constant 6 : index
    %6 = memref.load %arg0[%c6] : memref<16xf32, #tpu.memory_space<smem>>
    %c7 = arith.constant 7 : index
    %7 = memref.load %arg0[%c7] : memref<16xf32, #tpu.memory_space<smem>>
    %c8 = arith.constant 8 : index
    %8 = memref.load %arg0[%c8] : memref<16xf32, #tpu.memory_space<smem>>
    %c9 = arith.constant 9 : index
    %9 = memref.load %arg0[%c9] : memref<16xf32, #tpu.memory_space<smem>>
    %c0_0 = arith.constant 0 : index
    %c0_1 = arith.constant 0 : index
    %10 = vector.load %arg1[%c0_0, %c0_1] : memref<168x128xf32, #tpu.memory_space<vmem>>, vector<8x128xf32>
    %11 = vector.broadcast %0 : f32 to vector<8x128xf32>
    %12 = arith.mulf %10, %11 : vector<8x128xf32>
    %c8_2 = arith.constant 8 : index
    %c0_3 = arith.constant 0 : index
    %13 = vector.load %arg1[%c8_2, %c0_3] : memref<168x128xf32, #tpu.memory_space<vmem>>, vector<8x128xf32>
    %14 = vector.broadcast %1 : f32 to vector<8x128xf32>
    %15 = arith.mulf %13, %14 : vector<8x128xf32>
    %16 = arith.addf %12, %15 : vector<8x128xf32>
    %c16 = arith.constant 16 : index
    %c0_4 = arith.constant 0 : index
    %17 = vector.load %arg1[%c16, %c0_4] : memref<168x128xf32, #tpu.memory_space<vmem>>, vector<8x128xf32>
    %18 = vector.broadcast %2 : f32 to vector<8x128xf32>
    %19 = arith.mulf %17, %18 : vector<8x128xf32>
    %20 = arith.addf %16, %19 : vector<8x128xf32>
    %c32 = arith.constant 32 : index
    %c0_5 = arith.constant 0 : index
    %21 = vector.load %arg1[%c32, %c0_5] : memref<168x128xf32, #tpu.memory_space<vmem>>, vector<8x128xf32>
    %22 = vector.broadcast %3 : f32 to vector<8x128xf32>
    %23 = arith.mulf %21, %22 : vector<8x128xf32>
    %24 = arith.addf %20, %23 : vector<8x128xf32>
    %c40 = arith.constant 40 : index
    %c0_6 = arith.constant 0 : index
    %25 = vector.load %arg1[%c40, %c0_6] : memref<168x128xf32, #tpu.memory_space<vmem>>, vector<8x128xf32>
    %26 = vector.broadcast %4 : f32 to vector<8x128xf32>
    %27 = arith.mulf %25, %26 : vector<8x128xf32>
    %28 = arith.addf %24, %27 : vector<8x128xf32>
    %c48 = arith.constant 48 : index
    %c0_7 = arith.constant 0 : index
    %29 = vector.load %arg1[%c48, %c0_7] : memref<168x128xf32, #tpu.memory_space<vmem>>, vector<8x128xf32>
    %30 = vector.broadcast %5 : f32 to vector<8x128xf32>
    %31 = arith.mulf %29, %30 : vector<8x128xf32>
    %32 = arith.addf %28, %31 : vector<8x128xf32>
    %c64 = arith.constant 64 : index
    %c0_8 = arith.constant 0 : index
    %33 = vector.load %arg1[%c64, %c0_8] : memref<168x128xf32, #tpu.memory_space<vmem>>, vector<8x128xf32>
    %34 = vector.broadcast %6 : f32 to vector<8x128xf32>
    %35 = arith.mulf %33, %34 : vector<8x128xf32>
    %36 = arith.addf %32, %35 : vector<8x128xf32>
    %c72 = arith.constant 72 : index
    %c0_9 = arith.constant 0 : index
    %37 = vector.load %arg1[%c72, %c0_9] : memref<168x128xf32, #tpu.memory_space<vmem>>, vector<8x128xf32>
    %38 = vector.broadcast %7 : f32 to vector<8x128xf32>
    %39 = arith.mulf %37, %38 : vector<8x128xf32>
    %40 = arith.addf %36, %39 : vector<8x128xf32>
    %c80 = arith.constant 80 : index
    %c0_10 = arith.constant 0 : index
    %41 = vector.load %arg1[%c80, %c0_10] : memref<168x128xf32, #tpu.memory_space<vmem>>, vector<8x128xf32>
    %42 = vector.broadcast %8 : f32 to vector<8x128xf32>
    %43 = arith.mulf %41, %42 : vector<8x128xf32>
    %44 = arith.addf %40, %43 : vector<8x128xf32>
    %45 = vector.broadcast %9 : f32 to vector<8x128xf32>
    %46 = arith.addf %44, %45 : vector<8x128xf32>
    %cst = arith.constant 0.000000e+00 : f32
    %47 = vector.broadcast %cst : f32 to vector<8x128xf32>
    %48 = arith.maximumf %46, %47 : vector<8x128xf32>
    %c8_11 = arith.constant 8 : index
    %c0_12 = arith.constant 0 : index
    %49 = vector.load %arg1[%c8_11, %c0_12] : memref<168x128xf32, #tpu.memory_space<vmem>>, vector<8x128xf32>
    %50 = vector.broadcast %0 : f32 to vector<8x128xf32>
    %51 = arith.mulf %49, %50 : vector<8x128xf32>
    %c16_13 = arith.constant 16 : index
    %c0_14 = arith.constant 0 : index
    %52 = vector.load %arg1[%c16_13, %c0_14] : memref<168x128xf32, #tpu.memory_space<vmem>>, vector<8x128xf32>
    %53 = vector.broadcast %1 : f32 to vector<8x128xf32>
    %54 = arith.mulf %52, %53 : vector<8x128xf32>
    %55 = arith.addf %51, %54 : vector<8x128xf32>
    %c24 = arith.constant 24 : index
    %c0_15 = arith.constant 0 : index
    %56 = vector.load %arg1[%c24, %c0_15] : memref<168x128xf32, #tpu.memory_space<vmem>>, vector<8x128xf32>
    %57 = vector.broadcast %2 : f32 to vector<8x128xf32>
    %58 = arith.mulf %56, %57 : vector<8x128xf32>
    %59 = arith.addf %55, %58 : vector<8x128xf32>
    %c40_16 = arith.constant 40 : index
    %c0_17 = arith.constant 0 : index
    %60 = vector.load %arg1[%c40_16, %c0_17] : memref<168x128xf32, #tpu.memory_space<vmem>>, vector<8x128xf32>
    %61 = vector.broadcast %3 : f32 to vector<8x128xf32>
    %62 = arith.mulf %60, %61 : vector<8x128xf32>
    %63 = arith.addf %59, %62 : vector<8x128xf32>
    %c48_18 = arith.constant 48 : index
    %c0_19 = arith.constant 0 : index
    %64 = vector.load %arg1[%c48_18, %c0_19] : memref<168x128xf32, #tpu.memory_space<vmem>>, vector<8x128xf32>
    %65 = vector.broadcast %4 : f32 to vector<8x128xf32>
    %66 = arith.mulf %64, %65 : vector<8x128xf32>
    %67 = arith.addf %63, %66 : vector<8x128xf32>
    %c56 = arith.constant 56 : index
    %c0_20 = arith.constant 0 : index
    %68 = vector.load %arg1[%c56, %c0_20] : memref<168x128xf32, #tpu.memory_space<vmem>>, vector<8x128xf32>
    %69 = vector.broadcast %5 : f32 to vector<8x128xf32>
    %70 = arith.mulf %68, %69 : vector<8x128xf32>
    %71 = arith.addf %67, %70 : vector<8x128xf32>
    %c72_21 = arith.constant 72 : index
    %c0_22 = arith.constant 0 : index
    %72 = vector.load %arg1[%c72_21, %c0_22] : memref<168x128xf32, #tpu.memory_space<vmem>>, vector<8x128xf32>
    %73 = vector.broadcast %6 : f32 to vector<8x128xf32>
    %74 = arith.mulf %72, %73 : vector<8x128xf32>
    %75 = arith.addf %71, %74 : vector<8x128xf32>
    %c80_23 = arith.constant 80 : index
    %c0_24 = arith.constant 0 : index
    %76 = vector.load %arg1[%c80_23, %c0_24] : memref<168x128xf32, #tpu.memory_space<vmem>>, vector<8x128xf32>
    %77 = vector.broadcast %7 : f32 to vector<8x128xf32>
    %78 = arith.mulf %76, %77 : vector<8x128xf32>
    %79 = arith.addf %75, %78 : vector<8x128xf32>
    %c88 = arith.constant 88 : index
    %c0_25 = arith.constant 0 : index
    %80 = vector.load %arg1[%c88, %c0_25] : memref<168x128xf32, #tpu.memory_space<vmem>>, vector<8x128xf32>
    %81 = vector.broadcast %8 : f32 to vector<8x128xf32>
    %82 = arith.mulf %80, %81 : vector<8x128xf32>
    %83 = arith.addf %79, %82 : vector<8x128xf32>
    %84 = vector.broadcast %9 : f32 to vector<8x128xf32>
    %85 = arith.addf %83, %84 : vector<8x128xf32>
    %cst_26 = arith.constant 0.000000e+00 : f32
    %86 = vector.broadcast %cst_26 : f32 to vector<8x128xf32>
    %87 = arith.maximumf %85, %86 : vector<8x128xf32>
    %88 = arith.maximumf %48, %87 : vector<8x128xf32>
    %c32_27 = arith.constant 32 : index
    %c0_28 = arith.constant 0 : index
    %89 = vector.load %arg1[%c32_27, %c0_28] : memref<168x128xf32, #tpu.memory_space<vmem>>, vector<8x128xf32>
    %90 = vector.broadcast %0 : f32 to vector<8x128xf32>
    %91 = arith.mulf %89, %90 : vector<8x128xf32>
    %c40_29 = arith.constant 40 : index
    %c0_30 = arith.constant 0 : index
    %92 = vector.load %arg1[%c40_29, %c0_30] : memref<168x128xf32, #tpu.memory_space<vmem>>, vector<8x128xf32>
    %93 = vector.broadcast %1 : f32 to vector<8x128xf32>
    %94 = arith.mulf %92, %93 : vector<8x128xf32>
    %95 = arith.addf %91, %94 : vector<8x128xf32>
    %c48_31 = arith.constant 48 : index
    %c0_32 = arith.constant 0 : index
    %96 = vector.load %arg1[%c48_31, %c0_32] : memref<168x128xf32, #tpu.memory_space<vmem>>, vector<8x128xf32>
    %97 = vector.broadcast %2 : f32 to vector<8x128xf32>
    %98 = arith.mulf %96, %97 : vector<8x128xf32>
    %99 = arith.addf %95, %98 : vector<8x128xf32>
    %c64_33 = arith.constant 64 : index
    %c0_34 = arith.constant 0 : index
    %100 = vector.load %arg1[%c64_33, %c0_34] : memref<168x128xf32, #tpu.memory_space<vmem>>, vector<8x128xf32>
    %101 = vector.broadcast %3 : f32 to vector<8x128xf32>
    %102 = arith.mulf %100, %101 : vector<8x128xf32>
    %103 = arith.addf %99, %102 : vector<8x128xf32>
    %c72_35 = arith.constant 72 : index
    %c0_36 = arith.constant 0 : index
    %104 = vector.load %arg1[%c72_35, %c0_36] : memref<168x128xf32, #tpu.memory_space<vmem>>, vector<8x128xf32>
    %105 = vector.broadcast %4 : f32 to vector<8x128xf32>
    %106 = arith.mulf %104, %105 : vector<8x128xf32>
    %107 = arith.addf %103, %106 : vector<8x128xf32>
    %c80_37 = arith.constant 80 : index
    %c0_38 = arith.constant 0 : index
    %108 = vector.load %arg1[%c80_37, %c0_38] : memref<168x128xf32, #tpu.memory_space<vmem>>, vector<8x128xf32>
    %109 = vector.broadcast %5 : f32 to vector<8x128xf32>
    %110 = arith.mulf %108, %109 : vector<8x128xf32>
    %111 = arith.addf %107, %110 : vector<8x128xf32>
    %c96 = arith.constant 96 : index
    %c0_39 = arith.constant 0 : index
    %112 = vector.load %arg1[%c96, %c0_39] : memref<168x128xf32, #tpu.memory_space<vmem>>, vector<8x128xf32>
    %113 = vector.broadcast %6 : f32 to vector<8x128xf32>
    %114 = arith.mulf %112, %113 : vector<8x128xf32>
    %115 = arith.addf %111, %114 : vector<8x128xf32>
    %c104 = arith.constant 104 : index
    %c0_40 = arith.constant 0 : index
    %116 = vector.load %arg1[%c104, %c0_40] : memref<168x128xf32, #tpu.memory_space<vmem>>, vector<8x128xf32>
    %117 = vector.broadcast %7 : f32 to vector<8x128xf32>
    %118 = arith.mulf %116, %117 : vector<8x128xf32>
    %119 = arith.addf %115, %118 : vector<8x128xf32>
    %c112 = arith.constant 112 : index
    %c0_41 = arith.constant 0 : index
    %120 = vector.load %arg1[%c112, %c0_41] : memref<168x128xf32, #tpu.memory_space<vmem>>, vector<8x128xf32>
    %121 = vector.broadcast %8 : f32 to vector<8x128xf32>
    %122 = arith.mulf %120, %121 : vector<8x128xf32>
    %123 = arith.addf %119, %122 : vector<8x128xf32>
    %124 = vector.broadcast %9 : f32 to vector<8x128xf32>
    %125 = arith.addf %123, %124 : vector<8x128xf32>
    %cst_42 = arith.constant 0.000000e+00 : f32
    %126 = vector.broadcast %cst_42 : f32 to vector<8x128xf32>
    %127 = arith.maximumf %125, %126 : vector<8x128xf32>
    %c40_43 = arith.constant 40 : index
    %c0_44 = arith.constant 0 : index
    %128 = vector.load %arg1[%c40_43, %c0_44] : memref<168x128xf32, #tpu.memory_space<vmem>>, vector<8x128xf32>
    %129 = vector.broadcast %0 : f32 to vector<8x128xf32>
    %130 = arith.mulf %128, %129 : vector<8x128xf32>
    %c48_45 = arith.constant 48 : index
    %c0_46 = arith.constant 0 : index
    %131 = vector.load %arg1[%c48_45, %c0_46] : memref<168x128xf32, #tpu.memory_space<vmem>>, vector<8x128xf32>
    %132 = vector.broadcast %1 : f32 to vector<8x128xf32>
    %133 = arith.mulf %131, %132 : vector<8x128xf32>
    %134 = arith.addf %130, %133 : vector<8x128xf32>
    %c56_47 = arith.constant 56 : index
    %c0_48 = arith.constant 0 : index
    %135 = vector.load %arg1[%c56_47, %c0_48] : memref<168x128xf32, #tpu.memory_space<vmem>>, vector<8x128xf32>
    %136 = vector.broadcast %2 : f32 to vector<8x128xf32>
    %137 = arith.mulf %135, %136 : vector<8x128xf32>
    %138 = arith.addf %134, %137 : vector<8x128xf32>
    %c72_49 = arith.constant 72 : index
    %c0_50 = arith.constant 0 : index
    %139 = vector.load %arg1[%c72_49, %c0_50] : memref<168x128xf32, #tpu.memory_space<vmem>>, vector<8x128xf32>
    %140 = vector.broadcast %3 : f32 to vector<8x128xf32>
    %141 = arith.mulf %139, %140 : vector<8x128xf32>
    %142 = arith.addf %138, %141 : vector<8x128xf32>
    %c80_51 = arith.constant 80 : index
    %c0_52 = arith.constant 0 : index
    %143 = vector.load %arg1[%c80_51, %c0_52] : memref<168x128xf32, #tpu.memory_space<vmem>>, vector<8x128xf32>
    %144 = vector.broadcast %4 : f32 to vector<8x128xf32>
    %145 = arith.mulf %143, %144 : vector<8x128xf32>
    %146 = arith.addf %142, %145 : vector<8x128xf32>
    %c88_53 = arith.constant 88 : index
    %c0_54 = arith.constant 0 : index
    %147 = vector.load %arg1[%c88_53, %c0_54] : memref<168x128xf32, #tpu.memory_space<vmem>>, vector<8x128xf32>
    %148 = vector.broadcast %5 : f32 to vector<8x128xf32>
    %149 = arith.mulf %147, %148 : vector<8x128xf32>
    %150 = arith.addf %146, %149 : vector<8x128xf32>
    %c104_55 = arith.constant 104 : index
    %c0_56 = arith.constant 0 : index
    %151 = vector.load %arg1[%c104_55, %c0_56] : memref<168x128xf32, #tpu.memory_space<vmem>>, vector<8x128xf32>
    %152 = vector.broadcast %6 : f32 to vector<8x128xf32>
    %153 = arith.mulf %151, %152 : vector<8x128xf32>
    %154 = arith.addf %150, %153 : vector<8x128xf32>
    %c112_57 = arith.constant 112 : index
    %c0_58 = arith.constant 0 : index
    %155 = vector.load %arg1[%c112_57, %c0_58] : memref<168x128xf32, #tpu.memory_space<vmem>>, vector<8x128xf32>
    %156 = vector.broadcast %7 : f32 to vector<8x128xf32>
    %157 = arith.mulf %155, %156 : vector<8x128xf32>
    %158 = arith.addf %154, %157 : vector<8x128xf32>
    %c120 = arith.constant 120 : index
    %c0_59 = arith.constant 0 : index
    %159 = vector.load %arg1[%c120, %c0_59] : memref<168x128xf32, #tpu.memory_space<vmem>>, vector<8x128xf32>
    %160 = vector.broadcast %8 : f32 to vector<8x128xf32>
    %161 = arith.mulf %159, %160 : vector<8x128xf32>
    %162 = arith.addf %158, %161 : vector<8x128xf32>
    %163 = vector.broadcast %9 : f32 to vector<8x128xf32>
    %164 = arith.addf %162, %163 : vector<8x128xf32>
    %cst_60 = arith.constant 0.000000e+00 : f32
    %165 = vector.broadcast %cst_60 : f32 to vector<8x128xf32>
    %166 = arith.maximumf %164, %165 : vector<8x128xf32>
    %167 = arith.maximumf %127, %166 : vector<8x128xf32>
    %168 = arith.maximumf %88, %167 : vector<8x128xf32>
    %cst_61 = arith.constant 0.000000e+00 : f32
    %169 = vector.broadcast %cst_61 : f32 to vector<8x128xf32>
    %170 = vector.extract_strided_slice %168 {offsets = [0, 0], sizes = [8, 1], strides = [1, 1]} : vector<8x128xf32> to vector<8x1xf32>
    %171 = vector.shape_cast %170 : vector<8x1xf32> to vector<8x1xf32>
    %172 = vector.broadcast %171 : vector<8x1xf32> to vector<8x128xf32>
    %c128 = arith.constant 128 : index
    %c0_62 = arith.constant 0 : index
    %173 = vector.load %arg1[%c128, %c0_62] : memref<168x128xf32, #tpu.memory_space<vmem>>, vector<8x128xf32>
    %174 = arith.mulf %172, %173 : vector<8x128xf32>
    %175 = arith.addf %169, %174 : vector<8x128xf32>
    %176 = vector.extract_strided_slice %168 {offsets = [0, 2], sizes = [8, 1], strides = [1, 1]} : vector<8x128xf32> to vector<8x1xf32>
    %177 = vector.shape_cast %176 : vector<8x1xf32> to vector<8x1xf32>
    %178 = vector.broadcast %177 : vector<8x1xf32> to vector<8x128xf32>
    %c136 = arith.constant 136 : index
    %c0_63 = arith.constant 0 : index
    %179 = vector.load %arg1[%c136, %c0_63] : memref<168x128xf32, #tpu.memory_space<vmem>>, vector<8x128xf32>
    %180 = arith.mulf %178, %179 : vector<8x128xf32>
    %181 = arith.addf %175, %180 : vector<8x128xf32>
    %182 = vector.extract_strided_slice %168 {offsets = [0, 4], sizes = [8, 1], strides = [1, 1]} : vector<8x128xf32> to vector<8x1xf32>
    %183 = vector.shape_cast %182 : vector<8x1xf32> to vector<8x1xf32>
    %184 = vector.broadcast %183 : vector<8x1xf32> to vector<8x128xf32>
    %c144 = arith.constant 144 : index
    %c0_64 = arith.constant 0 : index
    %185 = vector.load %arg1[%c144, %c0_64] : memref<168x128xf32, #tpu.memory_space<vmem>>, vector<8x128xf32>
    %186 = arith.mulf %184, %185 : vector<8x128xf32>
    %187 = arith.addf %181, %186 : vector<8x128xf32>
    %cst_65 = arith.constant dense<0.000000e+00> : vector<128xf32>
    %188 = vector.multi_reduction <add>, %187, %cst_65 [0] : vector<8x128xf32> to vector<128xf32>
    %189 = vector.shape_cast %188 : vector<128xf32> to vector<1x128xf32>
    %c160 = arith.constant 160 : index
    %c0_66 = arith.constant 0 : index
    %190 = vector.load %arg1[%c160, %c0_66] : memref<168x128xf32, #tpu.memory_space<vmem>>, vector<1x128xf32>
    %191 = arith.addf %189, %190 : vector<1x128xf32>
    %cst_67 = arith.constant 0.000000e+00 : f32
    %192 = vector.broadcast %cst_67 : f32 to vector<1x128xf32>
    %193 = arith.maximumf %191, %192 : vector<1x128xf32>
    %194 = vector.shape_cast %193 : vector<1x128xf32> to vector<1x128xf32>
    %195 = vector.broadcast %194 : vector<1x128xf32> to vector<8x128xf32>
    %c152 = arith.constant 152 : index
    %c0_68 = arith.constant 0 : index
    %196 = vector.load %arg1[%c152, %c0_68] : memref<168x128xf32, #tpu.memory_space<vmem>>, vector<8x128xf32>
    %197 = arith.mulf %195, %196 : vector<8x128xf32>
    %cst_69 = arith.constant dense<0.000000e+00> : vector<8xf32>
    %198 = vector.multi_reduction <add>, %197, %cst_69 [1] : vector<8x128xf32> to vector<8xf32>
    %199 = vector.shape_cast %198 : vector<8xf32> to vector<8x1xf32>
    %200 = vector.shape_cast %199 : vector<8x1xf32> to vector<8x1xf32>
    %201 = vector.broadcast %200 : vector<8x1xf32> to vector<8x128xf32>
    %c0_70 = arith.constant 0 : index
    %c0_71 = arith.constant 0 : index
    %202 = vector.load %arg2[%c0_70, %c0_71] : memref<8x128xf32, #tpu.memory_space<vmem>>, vector<8x128xf32>
    tpu.vector_store %arg2[%c0_70, %c0_71], %201 {strides = array<i32>} : memref<8x128xf32, #tpu.memory_space<vmem>>, vector<8x128xf32>,
    return
  }
}

</mosaic_0001>

<bundles_post_ra>
// kernel: net_forward.1
= control target key start
LH: loop header
LB: loop body
LE: loop exit
PB: predicated region body
PF: predicated region fallthrough
CT: control target
= control target key end

     0   :  { %7 = vsyncpa [#allocation3], 0  ;;  %s311_s0 = inlined_call_operand.vmem [shape: f32[16], index: 0, kind: input, shape index: {}]   ;;  %s312_s1 = inlined_call_operand.vmem [shape: f32[168,128], index: 1, kind: input, shape index: {}]   ;;  %s313_s2 = inlined_call_operand.vmem [shape: f32[8,128], index: 2, kind: output, shape index: {}]  }
   0x1   :  { %s14_s11 = sshll.u32 %s311_s0, 4  ;;  %s15_s11 = int_to_ptr.vmem [resolvable:$true] %s14_s11 }
   0x2   :  { %s201_s12 = scalar_lea.vmem %s15_s11, 16  ;;  %p206_p1 = scmp.lt.s32.totalorder %s15_s11, %s15_s11 }
   0x3   :  { %p202_p0 = scmp.ne.s32.totalorder %s15_s11, %s201_s12  ;;  %p207_p2 = scmp.lt.s32.totalorder %s201_s12, %s201_s12 }
   0x5   :  { %p208_p3 = por %p207_p2, %p206_p1 }
   0x7   :  { %p209_p4 = pnand %p208_p3, %p202_p0 }
   0x9   :  { %212 = shalt.err (!%p209_p4)
}
   0xa   :  { %s215_s13 = smov [#allocation2]  }
   0xb   :  { %17 = dma.vmem_to_smem %s15_s11, 16, %s215_s13, [#allocation3]  }
   0xc   :  { %213 = dma.done.wait [#allocation3], 16  }
   0xd   :  { %214 = vsyncadd [#allocation3], 4294967280 }
   0xe   :  { %23 = sfence }
   0xf   :  { %s24_s14 = sld [smem:[#allocation2]]  ;;  %v216_v0 = vmov 0   ;;  %v217_v1 = vmov 4   ;;  %v34_v2 = vld [vmem:[%s312_s1] sm:$0xff]  ;;  %v37_v3 = vld [vmem:[%s312_s1 + $0x8] sm:$0xff]  ;;  %v41_v4 = vld [vmem:[%s312_s1 + $0x10] sm:$0xff] }
  0x10   :  { %197 = vset.pattern.permute.xlu0 %v216_v0  ;;  %s184_s15 = sld [smem:[#allocation2 + $0x1]]  ;;  %199 = vset.pattern.permute.xlu1 %v217_v1  ;;  %v45_v6 = vld [vmem:[%s312_s1 + $0x20] sm:$0xff]  ;;  %v75_v7 = vld [vmem:[%s312_s1 + $0x18] sm:$0xff]  ;;  %v49_v13 = vld [vmem:[%s312_s1 + $0x28] sm:$0xff] }
  0x11   :  { %s185_s16 = sld [smem:[#allocation2 + $0x2]]  ;;  %v53_v24 = vld [vmem:[%s312_s1 + $0x30] sm:$0xff]  ;;  %v57_v33 = vld [vmem:[%s312_s1 + $0x40] sm:$0xff]  ;;  %v82_v34 = vld [vmem:[%s312_s1 + $0x38] sm:$0xff] }
  0x12   :  { %s186_s17 = sld [smem:[#allocation2 + $0x3]]  ;;  %v61_v37 = vld [vmem:[%s312_s1 + $0x48] sm:$0xff]  ;;  %v65_v50 = vld [vmem:[%s312_s1 + $0x50] sm:$0xff]  ;;  %v106_v55 = vld [vmem:[%s312_s1 + $0x60] sm:$0xff] }
  0x13   :  { %s187_s0 = sld [smem:[#allocation2 + $0x4]]  ;;  %v89_v63 = vld [vmem:[%s312_s1 + $0x58] sm:$0xff] }
  0x14   :  { %s188_s22 = sld [smem:[#allocation2 + $0x5]] }
  0x15   :  { %s189_s25 = sld [smem:[#allocation2 + $0x6]]  ;;  %v35_v5 = vstv %s24_s14 }
  0x16   :  { %s253_s30 = sld [smem:[#allocation2 + $0x7]]  ;;  %v36_v8 = vmul.f32 %v35_v5, %v34_v2  ;;  %v38_v9 = vstv %s184_s15  ;;  %v72_v10 = vmul.f32 %v37_v3, %v35_v5  ;;  %v95_v18 = vmul.f32 %v45_v6, %v35_v5 }
  0x17   :  { %v39_v11 = vmul.f32 %v38_v9, %v37_v3  ;;  %v42_v12 = vstv %s185_s16  ;;  %v73_v14 = vmul.f32 %v41_v4, %v38_v9  ;;  %s258_s5 = sld [smem:[#allocation2 + $0x8]]  ;;  %v96_v27 = vmul.f32 %v49_v13, %v38_v9 }
  0x18   :  { %v43_v15 = vmul.f32 %v42_v12, %v41_v4  ;;  %v46_v16 = vstv %s186_s17  ;;  %v76_v17 = vmul.f32 %v75_v7, %v42_v12  ;;  %v98_v35 = vmul.f32 %v53_v24, %v42_v12 }
  0x19   :  { %v40_v19 = vadd.f32 %v39_v11, %v36_v8  ;;  %v47_v20 = vmul.f32 %v46_v16, %v45_v6  ;;  %v50_v21 = vstv %s187_s0  ;;  %v74_v22 = vadd.f32 %v73_v14, %v72_v10  ;;  %s192_s0 = sld [smem:[#allocation2 + $0x9]]  ;;  %v112_v14 = vld [vmem:[%s312_s1 + $0x70] sm:$0xff] }
  0x1a   :  { %v51_v23 = vmul.f32 %v50_v21, %v49_v13  ;;  %v54_v25 = vstv %s188_s22  ;;  %v78_v26 = vmul.f32 %v49_v13, %v46_v16  ;;  %v80_v31 = vmul.f32 %v53_v24, %v50_v21 }
  0x1b   :  { %v44_v28 = vadd.f32 %v43_v15, %v40_v19  ;;  %v58_v29 = vstv %s189_s25  ;;  %v77_v30 = vadd.f32 %v76_v17, %v74_v22  ;;  %v55_v32 = vmul.f32 %v54_v25, %v53_v24 }
  0x1c   :  { %v62_v38 = vstv %s253_s30  ;;  %v83_v40 = vmul.f32 %v82_v34, %v54_v25  ;;  %v59_v41 = vmul.f32 %v58_v29, %v57_v33  ;;  %v85_v42 = vmul.f32 %v61_v37, %v58_v29 }
  0x1d   :  { %v48_v36 = vadd.f32 %v47_v20, %v44_v28  ;;  %v79_v39 = vadd.f32 %v78_v26, %v77_v30  ;;  %v97_v45 = vadd.f32 %v96_v27, %v95_v18  ;;  %v100_v46 = vmul.f32 %v57_v33, %v46_v16 }
  0x1e   :  { %v63_v47 = vmul.f32 %v62_v38, %v61_v37  ;;  %v66_v48 = vstv %s258_s5  ;;  %v102_v53 = vmul.f32 %v61_v37, %v50_v21  ;;  %v87_v54 = vmul.f32 %v65_v50, %v62_v38 }
  0x1f   :  { %v52_v43 = vadd.f32 %v51_v23, %v48_v36  ;;  %v81_v44 = vadd.f32 %v80_v31, %v79_v39  ;;  %v99_v52 = vadd.f32 %v98_v35, %v97_v45  ;;  %v117_v56 = vmul.f32 %v49_v13, %v35_v5  ;;  %v109_v5 = vld [vmem:[%s312_s1 + $0x68] sm:$0xff] }
  0x20   :  { %v118_v57 = vmul.f32 %v53_v24, %v38_v9  ;;  %v120_v58 = vmul.f32 %v82_v34, %v42_v12  ;;  %v104_v62 = vmul.f32 %v65_v50, %v54_v25  ;;  %v122_v2 = vmul.f32 %v61_v37, %v46_v16 }
  0x21   :  { %v56_v49 = vadd.f32 %v55_v32, %v52_v43  ;;  %v84_v51 = vadd.f32 %v83_v40, %v81_v44  ;;  %v101_v61 = vadd.f32 %v100_v46, %v99_v52  ;;  %v67_v3 = vmul.f32 %v66_v48, %v65_v50  ;;  %v144_v46 = vld [vmem:[%s312_s1 + $0x80] sm:$0xff] }
  0x22   :  { %v119_v0 = vadd.f32 %v118_v57, %v117_v56  ;;  %v90_v4 = vmul.f32 %v89_v63, %v66_v48  ;;  %v107_v7 = vmul.f32 %v106_v55, %v58_v29  ;;  %v124_v11 = vmul.f32 %v65_v50, %v50_v21  ;;  %v132_v21 = vld [vmem:[%s312_s1 + $0x78] sm:$0xff] }
  0x23   :  { %v60_v59 = vadd.f32 %v59_v41, %v56_v49  ;;  %v86_v60 = vadd.f32 %v85_v42, %v84_v51  ;;  %v103_v6 = vadd.f32 %v102_v53, %v101_v61  ;;  %v110_v13 = vmul.f32 %v109_v5, %v62_v38 }
  0x24   :  { %v121_v9 = vadd.f32 %v120_v58, %v119_v0  ;;  %v126_v16 = vmul.f32 %v89_v63, %v54_v25  ;;  %v113_v18 = vmul.f32 %v112_v14, %v66_v48  ;;  %v128_v23 = vmul.f32 %v109_v5, %v58_v29 }
  0x25   :  { %v64_v8 = vadd.f32 %v63_v47, %v60_v59  ;;  %v88_v10 = vadd.f32 %v87_v54, %v86_v60  ;;  %v105_v12 = vadd.f32 %v104_v62, %v103_v6  ;;  %v69_v24 = vstv %s192_s0  ;;  %v151_v47 = vld [vmem:[%s312_s1 + $0x88] sm:$0xff]  ;;  %v167_v62 = vld [vmem:[%s312_s1 + $0xa0] sm:$0x1] }
  0x26   :  { %v123_v15 = vadd.f32 %v122_v2, %v121_v9  ;;  %v130_v28 = vmul.f32 %v112_v14, %v62_v38  ;;  %v133_v34 = vmul.f32 %v132_v21, %v66_v48  ;;  %v218_v45 = vmov 2   ;;  %v158_v48 = vld [vmem:[%s312_s1 + $0x90] sm:$0xff] }
  0x27   :  { %v108_v17 = vadd.f32 %v107_v7, %v105_v12  ;;  %v68_v19 = vadd.f32 %v67_v3, %v64_v8  ;;  %v91_v20 = vadd.f32 %v90_v4, %v88_v10  ;;  %v170_v58 = vlaneseq  ;;  %v174_v4 = vld [vmem:[%s312_s1 + $0x98] sm:$0xff] }
  0x28   :  { %v125_v22 = vadd.f32 %v124_v11, %v123_v15 }
  0x29   :  { %v111_v26 = vadd.f32 %v110_v13, %v108_v17  ;;  %v70_v31 = vadd.f32 %v69_v24, %v68_v19  ;;  %v92_v32 = vadd.f32 %v91_v20, %v69_v24  ;;  %v171_v61 = vshrl.u32 %v170_v58, 7 }
  0x2a   :  { %v127_v27 = vadd.f32 %v126_v16, %v125_v22 }
  0x2b   :  { %v114_v30 = vadd.f32 %v113_v18, %v111_v26  ;;  %v71_v36 = vmax.f32 %v70_v31, 0.0  ;;  %v93_v37 = vmax.f32 %v92_v32, 0.0  ;;  %v172_v2 = vsub.s32 0, %v171_v61 }
  0x2c   :  { %v129_v33 = vadd.f32 %v128_v23, %v127_v27 }
  0x2d   :  { %v115_v25 = vadd.f32 %v114_v30, %v69_v24  ;;  %v94_v41 = vmax.f32 %v71_v36, %v93_v37 }
  0x2e   :  { %v131_v35 = vadd.f32 %v130_v28, %v129_v33 }
  0x2f   :  { %v116_v40 = vmax.f32 %v115_v25, 0.0 }
  0x30   :  { %v134_v39 = vadd.f32 %v133_v34, %v131_v35 }
  0x32   :  { %v135_v29 = vadd.f32 %v134_v39, %v69_v24 }
  0x34   :  { %v136_v42 = vmax.f32 %v135_v29, 0.0 }
  0x36   :  { %v137_v43 = vmax.f32 %v116_v40, %v136_v42 }
  0x38   :  { %v138_v44 = vmax.f32 %v94_v41, %v137_v43 }
  0x3a   :  { %141 = vperm.xlu0 %197, %v138_v44   ;;  %155 = vperm.xlu1 %199, %v138_v44  }
  0x3e   :  { %198 = vset.pattern.permute.xlu0 %v218_v45 }
  0x3f   :  { %148 = vperm.xlu0 %198, %v138_v44  }
  0x43   :  { %200 = vset.pattern.permute.xlu0 %v217_v1 }
  0xb5   :  { %v142_v38 = vpop.permute.xlu0 %141  ;;  %v156_v49 = vpop.permute.xlu1 %155 }
  0xb6   :  { %v145_v51 = vmul.f32 %v144_v46, %v142_v38  ;;  %v159_v53 = vmul.f32 %v158_v48, %v156_v49 }
  0xba   :  { %v149_v50 = vpop.permute.xlu0 %148 }
  0xbb   :  { %v152_v52 = vmul.f32 %v151_v47, %v149_v50 }
  0xbd   :  { %v153_v54 = vadd.f32 %v152_v52, %v145_v51 }
  0xbf   :  { %v160_v1 = vadd.f32 %v159_v53, %v153_v54 }
  0xc1   :  { %v161_v55 = vrot.slane %v160_v1, 4 }
  0xc3   :  { %v162_v56 = vadd.f32 %v161_v55, %v160_v1 }
  0xc5   :  { %v163_v57 = vrot.slane %v162_v56, 2 }
  0xc7   :  { %v164_v59 = vadd.f32 %v163_v57, %v162_v56 }
  0xc9   :  { %v165_v60 = vrot.slane %v164_v59, 1 }
  0xcb   :  { %v166_v63 = vadd.f32 %v165_v60, %v164_v59 }
  0xcd   :  { %v168_v0 = vadd.f32 %v167_v62, %v166_v63 }
  0xcf   :  { %v169_v3 = vmax.f32 %v168_v0, 0.0 }
  0xd1   :  { %v173_v6 = vrot.slane %v169_v3, %v172_v2 }
  0xd3   :  { %v175_v7 = vmul.f32 %v174_v4, %v173_v6 }
  0xd5   :  { %176 = vadd.xlane.f32.xlu1 %v175_v7 }
 0x15e   :  { %v177_v8 = vpop.xlane.xlu1 %176 }
 0x15f   :  { %178 = vst [vmem:[%s313_s2] sm:$0xff] %v177_v8 }
 0x160   :  { %183 = vsyncpa [#allocation3], 1 }

</bundles_post_ra>
